<compile_context>
chip_gen: v7x
topology: tpu7x:2x2x1
jax: 0.10.0
libtpu: 0.0.40
codegen_flags: <defaults>
</compile_context>

<pallas_src>
import jax
import jax.numpy as jnp
from jax import lax
from jax.experimental import pallas as pl
from jax.experimental.pallas import tpu as pltpu

BN_EPS = 1e-5
_LANE = 128


def bn_fold(gamma, beta, mean, var, eps=BN_EPS):
    """Fold eval-mode BatchNorm into per-channel scale / bias."""
    scale = gamma / jnp.sqrt(var + eps)
    bias = beta - mean * scale
    return scale, bias


def prepare_fs_params(params):
    """Fold BN into the 1x1 convs and stack both branches.

    Static w.r.t. activations — call once at model-load time so the fold /
    stack ops do not launch before every forward call.
    Returns (w, bias) with w: (2*Cout, Cin) f32, bias: (2*Cout, 1) f32.
    """
    cout, cin = params["w1"].shape[:2]
    s1, c1 = bn_fold(*params["bn1"])
    s2, c2 = bn_fold(*params["bn2"])
    w1 = params["w1"].reshape(cout, cin) * s1[:, None]
    w2 = params["w2"].reshape(cout, cin) * s2[:, None]
    w = jnp.concatenate([w1, w2], axis=0).astype(jnp.float32)          # (2*Cout, Cin)
    b = jnp.concatenate([c1, c2], axis=0).reshape(2 * cout, 1).astype(jnp.float32)
    return w, b


def _fs_kernel(v_ref, u_ref, w_ref, b_ref, o_ref):
    cout = o_ref.shape[1]
    v = v_ref[0].astype(jnp.float32)                    # (Cin,  T) channels on sublanes
    u = u_ref[0].astype(jnp.float32)                    # (Cout, T)

    # Both 1x1-conv+BN+ReLU branches in one MXU pass:
    # (2*Cout, Cin) @ (Cin, T) -> (2*Cout, T), lane-dense output.
    xk = jnp.dot(w_ref[...], v, preferred_element_type=jnp.float32) + b_ref[...]
    xk = jnp.maximum(xk, 0.0)

    r = xk[:cout] * u                                   # x * u
    # z = k * sigmoid(r); tanh form = exact, one EUP op per element.
    z = xk[cout:] * (0.5 * jnp.tanh(0.5 * r) + 0.5)
    o_ref[0] = z.astype(o_ref.dtype)


def _pick_tile_hw(hw, cin, cout, act_bytes, vmem_budget=32 * 1024 * 1024):
    """Largest lane-dense HW tile under a VMEM budget valid on all generations
    (conservative for v7x's 64 MiB/TC; v5e's small scoped default is raised
    via vmem_limit_bytes)."""
    # Per HW column: double-buffered v/u/out DMA tiles + ~3 live f32
    # (2*Cout, T)-class intermediates the kernel body materializes.
    per_col = 2 * (cin + 2 * cout) * act_bytes + 3 * (2 * cout) * 4
    t = (vmem_budget // max(per_col, 1)) // _LANE * _LANE
    t = max(_LANE, min(2048, t))
    t = min(t, pl.cdiv(hw, _LANE) * _LANE)
    return int(t)


def fs_module_pallas(v_nchw, u_nchw, w, bias):
    B, Cin, H, W = v_nchw.shape
    Cout = w.shape[0] // 2
    assert u_nchw.shape == (B, Cout, H, W)
    HW = H * W
    act_dtype = v_nchw.dtype                 # keep activations in native dtype
    act_bytes = jnp.dtype(act_dtype).itemsize

    # NCHW -> (B, C, H*W): free contiguous reshape, no HBM transpose/upcast.
    v = v_nchw.reshape(B, Cin, HW)
    u = u_nchw.reshape(B, Cout, HW).astype(act_dtype)

    T = _pick_tile_hw(HW, Cin, Cout, act_bytes)
    HW_pad = pl.cdiv(HW, T) * T
    if HW_pad != HW:                          # pad to a lane-dense multiple of T
        pad = HW_pad - HW
        v = jnp.pad(v, ((0, 0), (0, 0), (0, pad)))
        u = jnp.pad(u, ((0, 0), (0, 0), (0, pad)))

    # Guarantee >= 2 grid blocks so v7x's second TensorCore is not idle.
    if B * (HW_pad // T) < 2 and T >= 2 * _LANE and HW_pad % (T // 2) == 0:
        T //= 2

    grid = (B, HW_pad // T)

    # VMEM actually needed per step (pipelined tiles + intermediates + weights);
    # clamp to [16 MiB (v5e scoped default), 64 MiB (v7x physical per TC)].
    step_bytes = (2 * (Cin + 2 * Cout) * T * act_bytes
                  + 4 * (2 * Cout) * T * 4
                  + (2 * Cout) * (Cin + 1) * 4)
    vmem_limit = int(min(64 * 1024 * 1024, max(16 * 1024 * 1024, 2 * step_bytes)))

    out = pl.pallas_call(
        _fs_kernel,
        out_shape=jax.ShapeDtypeStruct((B, Cout, HW_pad), act_dtype),
        grid=grid,
        in_specs=[
            pl.BlockSpec((1, Cin, T), lambda b, t: (b, 0, t)),        # v tile
            pl.BlockSpec((1, Cout, T), lambda b, t: (b, 0, t)),       # u tile
            pl.BlockSpec((2 * Cout, Cin), lambda b, t: (0, 0)),       # stacked weights
            pl.BlockSpec((2 * Cout, 1), lambda b, t: (0, 0)),         # stacked biases
        ],
        out_specs=pl.BlockSpec((1, Cout, T), lambda b, t: (b, 0, t)),
        compiler_params=pltpu.CompilerParams(
            dimension_semantics=("parallel", "parallel"),
            vmem_limit_bytes=vmem_limit,
        ),
    )(v, u, w, bias)

    if HW_pad != HW:
        out = out[:, :, :HW]
    return out.reshape(B, Cout, H, W)


def fs_module_reference(v, u, params):
    """Pure-JAX NCHW reference (eval-mode BN) for cross-checking the kernel."""
    dn = ("NCHW", "OIHW", "NCHW")

    s1, c1 = bn_fold(*params["bn1"])
    x = lax.conv_general_dilated(v, params["w1"], (1, 1), "VALID",
                                 dimension_numbers=dn)
    x = jnp.maximum(x * s1[None, :, None, None] + c1[None, :, None, None], 0.0)

    r = x * u

    s2, c2 = bn_fold(*params["bn2"])
    k = lax.conv_general_dilated(v, params["w2"], (1, 1), "VALID",
                                 dimension_numbers=dn)
    k = jnp.maximum(k * s2[None, :, None, None] + c2[None, :, None, None], 0.0)

    return k / (1.0 + jnp.exp(-r))


if __name__ == "__main__":
    B, Cin, Cout, H, W = 2, 4, 8, 16, 16
    key = jax.random.PRNGKey(0)
    ks = jax.random.split(key, 6)

    def bn_init(k, c):
        k1, k2, k3, k4 = jax.random.split(k, 4)
        return (1.0 + 0.1 * jax.random.normal(k1, (c,), jnp.float32),   # gamma
                0.1 * jax.random.normal(k2, (c,), jnp.float32),         # beta
                0.1 * jax.random.normal(k3, (c,), jnp.float32),         # running_mean
                0.5 + jax.random.uniform(k4, (c,), jnp.float32))        # running_var > 0

    params = {
        "w1": 0.3 * jax.random.normal(ks[0], (Cout, Cin, 1, 1), jnp.float32),
        "bn1": bn_init(ks[1], Cout),
        "w2": 0.3 * jax.random.normal(ks[2], (Cout, Cin, 1, 1), jnp.float32),
        "bn2": bn_init(ks[3], Cout),
    }
    v = jax.random.normal(ks[4], (B, Cin, H, W), jnp.float32)
    u = jax.random.normal(ks[5], (B, Cout, H, W), jnp.float32)

    w_stacked, bias_stacked = prepare_fs_params(params)   # once, at "load" time
    out = fs_module_pallas(v, u, w_stacked, bias_stacked)
    out = jax.block_until_ready(out)

    ref = fs_module_reference(v, u, params)
    assert out.shape == ref.shape == (B, Cout, H, W)
    max_err = float(jnp.max(jnp.abs(out.astype(jnp.float32) - ref)))
    assert bool(jnp.allclose(out.astype(jnp.float32), ref, atol=1e-3, rtol=1e-3)), \
        f"max abs err {max_err}"
    print("KERNEL_OK")
</pallas_src>

<mosaic_0001>
module attributes {stable_mosaic.version = 11 : i64} {
  func.func @_fs_kernel(%arg0: i32, %arg1: i32, %arg2: memref<1x4x256xf32, #tpu.memory_space<vmem>>, %arg3: memref<1x8x256xf32, #tpu.memory_space<vmem>>, %arg4: memref<16x4xf32, #tpu.memory_space<vmem>>, %arg5: memref<16x1xf32, #tpu.memory_space<vmem>>, %arg6: memref<1x8x256xf32, #tpu.memory_space<vmem>>) attributes {dimension_semantics = [#tpu.dimension_semantics<parallel>, #tpu.dimension_semantics<parallel>], iteration_bounds = array<i64: 2, 1>, scalar_prefetch = 0 : i64, scratch_operands = 0 : i64, tpu.core_type = #tpu.core_type<tc>, window_params = [{transform_indices = @transform_0, window_bounds = array<i64: 1, 4, 256>}, {transform_indices = @transform_1, window_bounds = array<i64: 1, 8, 256>}, {pipeline_mode = #tpu.pipeline_mode<synchronous>, transform_indices = @transform_2, window_bounds = array<i64: 16, 4>}, {pipeline_mode = #tpu.pipeline_mode<synchronous>, transform_indices = @transform_3, window_bounds = array<i64: 16, 1>}, {transform_indices = @transform_4, window_bounds = array<i64: 1, 8, 256>}]} {
    %c0 = arith.constant 0 : index
    %c0_0 = arith.constant 0 : index
    %c0_1 = arith.constant 0 : index
    %0 = vector.load %arg2[%c0, %c0_0, %c0_1] : memref<1x4x256xf32, #tpu.memory_space<vmem>>, vector<1x4x256xf32>
    %1 = vector.shape_cast %0 : vector<1x4x256xf32> to vector<4x256xf32>
    %c0_2 = arith.constant 0 : index
    %c0_3 = arith.constant 0 : index
    %c0_4 = arith.constant 0 : index
    %2 = vector.load %arg3[%c0_2, %c0_3, %c0_4] : memref<1x8x256xf32, #tpu.memory_space<vmem>>, vector<1x8x256xf32>
    %3 = vector.shape_cast %2 : vector<1x8x256xf32> to vector<8x256xf32>
    %c0_5 = arith.constant 0 : index
    %c0_6 = arith.constant 0 : index
    %4 = vector.load %arg4[%c0_5, %c0_6] : memref<16x4xf32, #tpu.memory_space<vmem>>, vector<16x4xf32>
    %cst = arith.constant dense<0.000000e+00> : vector<16x256xf32>
    %5 = tpu.matmul %4, %1, %cst {dimension_numbers = #tpu.dot_dimension_numbers<[1], [0], [0], [1], [0, 0, 1, 1], [], []>} : vector<16x4xf32>, vector<4x256xf32>, vector<16x256xf32> -> vector<16x256xf32>
    %c0_7 = arith.constant 0 : index
    %c0_8 = arith.constant 0 : index
    %6 = vector.load %arg5[%c0_7, %c0_8] : memref<16x1xf32, #tpu.memory_space<vmem>>, vector<16x1xf32>
    %7 = vector.broadcast %6 : vector<16x1xf32> to vector<16x256xf32>
    %8 = arith.addf %5, %7 : vector<16x256xf32>
    %cst_9 = arith.constant 0.000000e+00 : f32
    %9 = vector.broadcast %cst_9 : f32 to vector<16x256xf32>
    %10 = arith.maximumf %8, %9 : vector<16x256xf32>
    %11 = vector.extract_strided_slice %10 {offsets = [0, 0], sizes = [8, 256], strides = [1, 1]} : vector<16x256xf32> to vector<8x256xf32>
    %12 = arith.mulf %11, %3 : vector<8x256xf32>
    %13 = vector.extract_strided_slice %10 {offsets = [8, 0], sizes = [8, 256], strides = [1, 1]} : vector<16x256xf32> to vector<8x256xf32>
    %cst_10 = arith.constant 5.000000e-01 : f32
    %14 = vector.broadcast %cst_10 : f32 to vector<8x256xf32>
    %15 = arith.mulf %14, %12 : vector<8x256xf32>
    %16 = math.tanh %15 : vector<8x256xf32>
    %cst_11 = arith.constant 5.000000e-01 : f32
    %17 = vector.broadcast %cst_11 : f32 to vector<8x256xf32>
    %18 = arith.mulf %17, %16 : vector<8x256xf32>
    %cst_12 = arith.constant 5.000000e-01 : f32
    %19 = vector.broadcast %cst_12 : f32 to vector<8x256xf32>
    %20 = arith.addf %18, %19 : vector<8x256xf32>
    %21 = arith.mulf %13, %20 : vector<8x256xf32>
    %c0_13 = arith.constant 0 : index
    %c0_14 = arith.constant 0 : index
    %c0_15 = arith.constant 0 : index
    %22 = vector.load %arg6[%c0_13, %c0_14, %c0_15] : memref<1x8x256xf32, #tpu.memory_space<vmem>>, vector<1x8x256xf32>
    %23 = vector.shape_cast %22 : vector<1x8x256xf32> to vector<8x256xf32>
    %24 = vector.shape_cast %21 : vector<8x256xf32> to vector<1x8x256xf32>
    tpu.vector_store %arg6[%c0_13, %c0_14, %c0_15], %24 {strides = array<i32>} : memref<1x8x256xf32, #tpu.memory_space<vmem>>, vector<1x8x256xf32>,
    return
  }
  func.func @transform_0(%arg0: i32, %arg1: i32) -> (i32, i32, i32) {
    %c0_i32 = arith.constant 0 : i32
    %c0_i32_0 = arith.constant 0 : i32
    return %arg0, %c0_i32, %arg1 : i32, i32, i32
  }
  func.func @transform_1(%arg0: i32, %arg1: i32) -> (i32, i32, i32) {
    %c0_i32 = arith.constant 0 : i32
    %c0_i32_0 = arith.constant 0 : i32
    return %arg0, %c0_i32, %arg1 : i32, i32, i32
  }
  func.func @transform_2(%arg0: i32, %arg1: i32) -> (i32, i32) {
    %c0_i32 = arith.constant 0 : i32
    %c0_i32_0 = arith.constant 0 : i32
    %c0_i32_1 = arith.constant 0 : i32
    return %c0_i32, %c0_i32_0 : i32, i32
  }
  func.func @transform_3(%arg0: i32, %arg1: i32) -> (i32, i32) {
    %c0_i32 = arith.constant 0 : i32
    %c0_i32_0 = arith.constant 0 : i32
    %c0_i32_1 = arith.constant 0 : i32
    return %c0_i32, %c0_i32_0 : i32, i32
  }
  func.func @transform_4(%arg0: i32, %arg1: i32) -> (i32, i32, i32) {
    %c0_i32 = arith.constant 0 : i32
    %c0_i32_0 = arith.constant 0 : i32
    return %arg0, %c0_i32, %arg1 : i32, i32, i32
  }
}

</mosaic_0001>

<bundles_post_ra>
// kernel: tpu_custom_call.1
= control target key start
LH: loop header
LB: loop body
LE: loop exit
PB: predicated region body
PF: predicated region fallthrough
CT: control target
= control target key end

     0   :  { %9 = vsyncpa [#allocation3], 0  ;;  %s944_s0 = inlined_call_operand.hbm [shape: f32[2,4,256], index: 0, kind: input, shape index: {}]   ;;  %s945_s1 = inlined_call_operand.vmem [shape: f32[2,8,256], index: 1, kind: input, shape index: {}]   ;;  %s946_s2 = inlined_call_operand.vmem [shape: f32[16,4], index: 2, kind: input, shape index: {}]   ;;  %s947_s3 = inlined_call_operand.vmem [shape: f32[16,1], index: 3, kind: input, shape index: {}]   ;;  %s948_s4 = inlined_call_operand.hbm [shape: f32[2,8,256], index: 4, kind: output, shape index: {}]  }
   0x1   :  { %11 = vsyncpa [#allocation3 + $0x1], 0 }
   0x2   :  { %12 = vsyncpa [#allocation4], 0 }
   0x3   :  { %14 = vsyncpa [#allocation4 + $0x1], 0  ;;  %s754_s15 = smov 0   ;;  %s756_s16 = smov 0  }
   0x4   :  { %s758_s17 = smov 0   ;;  %s760_s18 = smov 0  }
   0x5   :  { %s762_s19 = smov 0   ;;  %s764_s20 = smov 0  }
   0x6 LB: > { %s515_s21 = sadd.s32 4294967295, %s723_s20   ;;  %s516_s22 = sadd.s32 4294967294, %s723_s20   ;;  %s723_s20 = sphi %s764_s20, %s20_s20   ;;  %s719_s19 = sphi %s762_s19, %s964_s19   ;;  %s715_s18 = sphi %s760_s18, %s963_s18   ;;  %s711_s17 = sphi %s758_s17, %s962_s17   ;;  %s707_s16 = sphi %s756_s16, %s961_s16   ;;  %s703_s15 = sphi %s754_s15, %s960_s15  }
   0x7   : > { %s32_s23 = sadd.s32 1, %s719_s19  ;;  %s41_s24 = sadd.s32 1, %s711_s17 }
   0x8   : > { %p34_p0 = scmp.ge.s32.totalorder %s32_s23, 2  ;;  %p48_p1 = scmp.ne.s32.totalorder %s711_s17, %s707_s16 }
   0x9   : > { %p49_p2 = scmp.eq.s32.totalorder %s723_s20, 0  ;;  %p54_p3 = scmp.ne.s32.totalorder %s707_s16, %s703_s15 }
   0xa   : > { %s966_s23 = smov (%p34_p0, %s32_s23), 0  ;;  %p55_p5 = scmp.eq.s32.totalorder %s515_s21, 0 }
   0xb   : > { %p795_p4 = por %p49_p2, %p48_p1  ;;  %s36_s26 = ssub.s32 %s719_s19, %s966_s23 }
   0xc   : > { %p150_p6 = scmp.eq.s32.totalorder %s515_s21, 1  ;;  %p39_p7 = scmp.eq.s32.totalorder %s36_s26, 0 }
   0xd   : > { %p801_p8 = por %p55_p5, %p54_p3  ;;  %p156_p10 = scmp.eq.s32.totalorder %s516_s22, 1 }
   0xe   : > { %p805_p9 = por %p150_p6, %p48_p1  ;;  %p553_p13 = scmp.lt.s32.totalorder %s723_s20, 2 }
   0xf   : > { %s810_s29 = scalar_select %p39_p7, %s711_s17, %s41_s24  }
  0x10   : > { %s952_s28 = scalar_select %p805_p9, 1, 0 }
  0x11   : > { %p812_p11 = por %p156_p10, %p54_p3  ;;  %s182_s5 = sand.u32 1, %s711_s17  }
  0x12   : > { %s519_s6 = sshll.u32 %s182_s5, 3  ;;  %s536_s7 = sshll.u32 %s719_s19, 7 }
  0x13   : > { %s953_s30 = scalar_select %p812_p11, 1, 0 }
  0x14   : > { %s823_s10 = scalar_lea.hbm %s944_s0, %s536_s7  ;;  %s186_s11 = scalar_lea.vmem [#allocation2], %s519_s6 }
  0x15   : > { %s196_s12 = sshll.u32 %s186_s11, 4  ;;  %p829_p0 = pnand %p553_p13, %p795_p4  ;;  %s825_s12 = int_to_ptr.vmem [resolvable:$true] %s196_s12 }
  0x16   : > { %s183_s14 = scalar_lea.sflag [#allocation3], %s182_s5  ;;  %s611_s21 = scalar_lea.hbm %s823_s10, 128 }
  0x17   : > { %p612_p3 = scmp.ne.s32.totalorder %s823_s10, %s611_s21  ;;  %p613_p5 = pneg %p829_p0 }
  0x18   : > { %s616_s25 = scalar_lea.hbm %s944_s0, 256  ;;  %p617_p4 = scmp.lt.u32.totalorder %s823_s10, %s944_s0 }
  0x19   : > { %p614_p6 = pnand %p613_p5, %p612_p3  ;;  %p618_p10 = scmp.lt.u32.totalorder %s616_s25, %s611_s21 }
  0x1a   : > { %p620_p12 = scmp.lt.u32.totalorder %s611_s21, %s823_s10 }
  0x1b   : > { %p615_p7 = pneg %p614_p6  ;;  %p619_p13 = por %p618_p10, %p617_p4 }
  0x1d   : > { %p621_p1 = por %p620_p12, %p619_p13 }
  0x1f   : > { %p622_p2 = pnand %p621_p1, %p615_p7 }
  0x21   : > { %625 = shalt.err (!%p622_p2)
}
  0x22   : > { %s626_s5 = scalar_lea.vmem %s825_s12, 128  ;;  %s725_s7 = smov [#allocation2]  }
  0x23   : > { %p627_p3 = scmp.ne.s32.totalorder %s825_s12, %s626_s5  ;;  %s631_s8 = sshll.u32 %s725_s7, 4  ;;  %s632_s8 = int_to_ptr.vmem [resolvable:$false] %s631_s8 }
  0x24   : > { %s633_s9 = scalar_lea.vmem %s632_s8, 256  ;;  %p634_p9 = scmp.lt.s32.totalorder %s825_s12, %s632_s8 }
  0x25   : > { %p629_p6 = pnand %p627_p3, %p613_p5  ;;  %p635_p4 = scmp.lt.s32.totalorder %s633_s9, %s626_s5 }
  0x27   : > { %p630_p11 = pneg %p629_p6  ;;  %p636_p10 = por %p635_p4, %p634_p9 }
  0x29   : > { %p637_p12 = pnand %p636_p10, %p630_p11 }
  0x2b   : > { %640 = shalt.err (!%p637_p12)
}
  0x2c   : > { %548 = dma.hbm_to_vmem [thread:$0]  (!%p829_p0), %s823_s10, 128, %s825_s12, %s183_s14  }
  0x2d   : > { %p955_p1 = scmp.lt.s32.totalorder %s723_s20, 3  ;;  %p956_p2 = scmp.ge.s32.totalorder %s723_s20, 1 }
  0x2f   : > { %p215_p5 = pnand %p956_p2, %p955_p1 }
  0x30   : > { %s865_s11 = sand.u32 (!%p215_p5), 1, %s707_s16  }
  0x31   : > { %218 = sbr.rel (%p215_p5) target bundleno = 314 (0x13a), region = 36  ;;  %s523_s21 = sshll.u32 (!%p215_p5), %s865_s11, 3 }
  0x32   : > { %s221_s22 = scalar_lea.sflag (!%p215_p5), [#allocation3], %s865_s11  ;;  %s224_s24 = scalar_lea.vmem (!%p215_p5), [#allocation2], %s523_s21 }
  0x38   : > { %694 = dma.done.wait (%p801_p8), %s221_s22, 128  }
  0x39   : > { %696 = vsyncadd (%p801_p8), %s221_s22, 4294967168  ;;  %v726_v0 = vmov 0.0   ;;  %v727_v1 = vmov 0   ;;  %v270_v2 = vld [vmem:[%s224_s24] sm:$0xff]  ;;  %vm296_vm0 = vcmask 1043456   ;;  %vm289_vm1 = vcmask 31744  }
  0x3a   : > { %365 = vmatprep.mubr.f32.mxu0 %v726_v0  ;;  %371 = vmatprep.mubr.f32.mxu1 %v726_v0  ;;  %v288_v3 = vcombine.high %v270_v2, %v270_v2  ;;  %v275_v4 = vld [vmem:[%s947_s3] sm:$0xff]  ;;  %v274_v6 = vld [vmem:[%s946_s2 + $0x8] sm:$0xff]  ;;  %p260_p8 = scmp.lt.s32.totalorder %s715_s18, 1  ;;  %s524_s22 = sshll.u32 %s865_s11, 4 }
  0x3b   : > { %605 = vset.pattern.permute.xlu0 %v727_v1  ;;  %v273_v5 = vld [vmem:[%s946_s2] sm:$0xff]  ;;  %v276_v7 = vld [vmem:[%s947_s3 + $0x8] sm:$0xff]  ;;  %s538_s24 = sshll.u32 %s715_s18, 8  ;;  %s257_s10 = scalar_lea.vmem [#allocation5], %s524_s22 }
  0x3c   : > { %279 = vperm.xlu0 %605, %v275_v4   ;;  %527 = vmatprep.subr.msk.mxu0 %vm296_vm0, %v288_v3  ;;  %s261_s5 = scalar_select %p260_p8, %s715_s18, 1 }
  0x3d   : > { %539 = vmatprep.subr.msk.mxu1 %vm296_vm0, %v288_v3  ;;  %528 = vmatpush1.msk.msra.mxu0 %vm296_vm0, %v270_v2  ;;  %s413_s12 = sshll.u32 %s257_s10, 4  ;;  %s895_s27 = scalar_lea.hbm %s948_s4, %s538_s24  ;;  %s897_s12 = int_to_ptr.vmem [resolvable:$true] %s413_s12 }
  0x3e   : > { %540 = vmatpush1.msk.msra.mxu1 %vm296_vm0, %v270_v2  ;;  %529 = vmatmul.mubr.msk.f32.vlgmr.msra.gmra.mrb[0].mxu0 %vm289_vm1, %v273_v5  ;;  %s537_s7 = sshll.u32 %s261_s5, 4  ;;  %s397_s25 = scalar_lea.sflag [#allocation4], %s865_s11 }
  0x3f   : > { %530 = vmatmul.mubr.msk.f32.vlgmr.msra.gmra.mrb[0].mxu1 %vm289_vm1, %v274_v6  ;;  %s267_s21 = scalar_lea.vmem %s945_s1, %s537_s7  ;;  %s641_s18 = scalar_lea.vmem %s897_s12, 256 }
  0x40   : > { %284 = vperm.xlu0 %605, %v276_v7   ;;  %v271_v14 = vld [vmem:[%s267_s21] sm:$0xff]  ;;  %v272_v17 = vld [vmem:[%s267_s21 + $0x8] sm:$0xff]  ;;  %p642_p9 = scmp.ne.s32.totalorder %s897_s12, %s641_s18  ;;  %p957_p11 = scmp.ne.s32.totalorder %s952_s28, 0 }
  0x41   : > { %s728_s26 = smov [#allocation5]  }
  0x42   : > { %p643_p0 = pnand %p642_p9, %p957_p11  ;;  %s645_s6 = sshll.u32 %s728_s26, 4  ;;  %s646_s6 = int_to_ptr.vmem [resolvable:$false] %s645_s6 }
  0x43   : > { %s647_s5 = scalar_lea.vmem %s646_s6, 512  ;;  %p648_p13 = scmp.lt.s32.totalorder %s897_s12, %s646_s6 }
  0x44   : > { %p644_p7 = pneg %p643_p0  ;;  %p649_p3 = scmp.lt.s32.totalorder %s647_s5, %s641_s18 }
  0x46   : > { %p650_p6 = por %p649_p3, %p648_p13 }
  0x48   : > { %p651_p4 = pnand %p650_p6, %p644_p7 }
  0xbb   : > { %v280_v8 = vpop.permute.xlu0 %279 }
  0xbf   : > { %v285_v23 = vpop.permute.xlu0 %284 }
 0x111   : > { %v367_v9 = vpop.f32.mrb[0].mxu0 }
 0x112   : > { %v373_v10 = vpop.f32.mrb[0].mxu1  ;;  %v368_v11 = vadd.f32 %v367_v9, %v280_v8  ;;  %v369_v12 = vpop.f32.mrb[1].mxu0 }
 0x113   : > { %v375_v13 = vpop.f32.mrb[1].mxu1  ;;  %v370_v15 = vadd.f32 %v369_v12, %v280_v8  ;;  %v374_v24 = vadd.f32 %v373_v10, %v285_v23 }
 0x114   : > { %v378_v16 = vmax.f32 %v368_v11, 0.0  ;;  %v376_v26 = vadd.f32 %v375_v13, %v285_v23 }
 0x115   : > { %v379_v18 = vmax.f32 %v370_v15, 0.0  ;;  %v380_v30 = vmax.f32 %v374_v24, 0.0 }
 0x116   : > { %v382_v19 = vmul.f32 %v378_v16, %v271_v14  ;;  %v381_v32 = vmax.f32 %v376_v26, 0.0 }
 0x117   : > { %v383_v20 = vmul.f32 %v379_v18, %v272_v17 }
 0x118   : > { %v384_v21 = vmul.f32 0.5, %v382_v19 }
 0x119   : > { %v385_v22 = vmul.f32 0.5, %v383_v20 }
 0x11a   : > { %607 = vtanh.f32 %v384_v21 }
 0x11b   : > { %609 = vtanh.f32 %v385_v22 }
 0x124   : > { %v608_v25 = vpop.eup %607 }
 0x125   : > { %v610_v27 = vpop.eup %609  ;;  %v388_v28 = vmul.f32 0.5, %v608_v25 }
 0x126   : > { %v389_v29 = vmul.f32 0.5, %v610_v27 }
 0x127   : > { %v390_v31 = vadd.f32 0.5, %v388_v28 }
 0x128   : > { %v391_v33 = vadd.f32 0.5, %v389_v29 }
 0x129   : > { %v392_v34 = vmul.f32 %v390_v31, %v380_v30 }
 0x12a   : > { %v393_v35 = vmul.f32 %v391_v33, %v381_v32 }
 0x12b   : > { %394 = vst [vmem:[%s257_s10] sm:$0xff] %v392_v34 }
 0x12c   : > { %395 = vst [vmem:[%s257_s10 + $0x8] sm:$0xff] %v393_v35 }
 0x12d   : > { %654 = shalt.err (!%p651_p4)
}
 0x12e   : > { %s655_s11 = scalar_lea.hbm %s895_s27, 256  ;;  %s659_s9 = scalar_lea.hbm %s948_s4, 512 }
 0x12f   : > { %p656_p10 = scmp.ne.s32.totalorder %s895_s27, %s655_s11  ;;  %p660_p2 = scmp.lt.u32.totalorder %s895_s27, %s948_s4 }
 0x130   : > { %p661_p5 = scmp.lt.u32.totalorder %s659_s9, %s655_s11  ;;  %p663_p9 = scmp.lt.u32.totalorder %s655_s11, %s895_s27 }
 0x131   : > { %p657_p12 = pnand %p656_p10, %p957_p11 }
 0x132   : > { %p662_p8 = por %p661_p5, %p660_p2 }
 0x133   : > { %p658_p1 = pneg %p657_p12 }
 0x134   : > { %p664_p0 = por %p663_p9, %p662_p8 }
 0x136   : > { %p665_p7 = pnand %p664_p0, %p658_p1 }
 0x138   : > { %668 = shalt.err (!%p665_p7)
}
 0x139   : > { %543 = dma.vmem_to_hbm [thread:$0]  (%p957_p11), %s897_s12, 256, %s895_s27, %s397_s25  }
 0x13a PF: > { %s425_s24 = sand.u32 1, %s703_s15   ;;  %p958_p13 = scmp.ne.s32.totalorder %s953_s30, 0 }
 0x13b   : > { %p959_p3 = scmp.ge.s32.totalorder %s723_s20, 2  ;;  %s426_s10 = scalar_lea.sflag [#allocation4], %s425_s24 }
 0x13d   : > { %p550_p6 = pnand %p959_p3, %p958_p13 }
 0x13f   : > { %698 = dma.done.wait (!%p550_p6), %s426_s10, 256  }
 0x140   : > { %700 = vsyncadd (!%p550_p6), %s426_s10, 4294967040  ;;  %s20_s20 = sadd.s32 1, %s723_s20   ;;  %s960_s15 = smov %s707_s16 }
 0x141   : > { %p17_p4 = scmp.ge.s32.totalorder %s20_s20, 4   ;;  %s961_s16 = smov %s711_s17 }
 0x142   : > { %s962_s17 = smov %s810_s29  ;;  %s963_s18 = smov %s719_s19 }
 0x143   : > { %s964_s19 = smov %s966_s23  ;;  %19 = sbr.rel (!%p17_p4) target bundleno = 6 (0x6), region = 84 }
 0x14a   :  { %431 = vsyncpa [#allocation3], 1 }
 0x14b   :  { %433 = vsyncpa [#allocation3 + $0x1], 1 }
 0x14c   :  { %434 = vsyncpa [#allocation4], 1 }
 0x14d   :  { %436 = vsyncpa [#allocation4 + $0x1], 1 }

</bundles_post_ra>
